<compile_context>
chip_gen: v7x
topology: tpu7x:2x2x1
jax: 0.10.0
libtpu: 0.0.40
codegen_flags: <defaults>
</compile_context>

<pallas_src>
from functools import partial

import jax
import jax.numpy as jnp
from jax.experimental import pallas as pl
from jax.experimental.pallas import tpu as pltpu


ROWS_PER_STEP = 16  # rows gathered per grid step -> (16, 128) f32 output tile


# ---------------------------------------------------------------------------
# Pallas fused gather kernel
# ---------------------------------------------------------------------------
def _fused_gather_kernel(idx_ref, table_ref, out_ref):
    # idx_ref:   (n_pad,) int32 in SMEM (scalar prefetch)
    # table_ref: (total_rows, D) in VMEM -- the whole stacked table, loaded once
    # out_ref:   (ROWS_PER_STEP, D) output tile for this grid step
    base = pl.program_id(0) * ROWS_PER_STEP
    rows = []
    for r in range(ROWS_PER_STEP):           # static unroll
        idx = idx_ref[base + r]              # dynamic scalar read from SMEM
        rows.append(table_ref[pl.ds(idx, 1), :])  # dynamic (1, D) sublane slice
    # one full, unmasked (ROWS_PER_STEP, D) store
    out_ref[...] = jnp.concatenate(rows, axis=0)


def fused_gather(table, indices):
    """Gather rows `table[indices]` -> (N, D) with one Pallas TPU kernel."""
    indices = indices.reshape(-1).astype(jnp.int32)
    n = indices.shape[0]
    total_rows, d = table.shape

    # clamp (avoid DMA-level faults on bad indices) and pad to a full tile
    indices = jnp.clip(indices, 0, total_rows - 1)
    n_pad = ((n + ROWS_PER_STEP - 1) // ROWS_PER_STEP) * ROWS_PER_STEP
    if n_pad != n:
        indices = jnp.pad(indices, (0, n_pad - n))

    table_bytes = total_rows * d * table.dtype.itemsize
    vmem_limit = min(64 * 1024 * 1024,
                     max(8 * 1024 * 1024, 2 * table_bytes + (1 << 20)))

    out = pl.pallas_call(
        _fused_gather_kernel,
        out_shape=jax.ShapeDtypeStruct((n_pad, d), table.dtype),
        grid_spec=pltpu.PrefetchScalarGridSpec(
            num_scalar_prefetch=1,
            grid=(n_pad // ROWS_PER_STEP,),
            # Whole table as one block -> DMA'd into VMEM once (block index is
            # constant across the grid), then reused by every step.
            in_specs=[pl.BlockSpec((total_rows, d), lambda i, idx_ref: (0, 0))],
            out_specs=pl.BlockSpec((ROWS_PER_STEP, d),
                                   lambda i, idx_ref: (i, 0)),
        ),
        compiler_params=pltpu.CompilerParams(
            dimension_semantics=("parallel",),   # independent output tiles
            vmem_limit_bytes=vmem_limit,
        ),
    )(indices, table)
    return out[:n]


# ---------------------------------------------------------------------------
# Fused, jitted forward: one gather call services all 6 outputs.
# ---------------------------------------------------------------------------
@partial(jax.jit, static_argnames=("mode",))
def _forward_impl(origin_entity, origin_relation, entity, relation,
                  positive, negative, mode):
    batch, neg_size = negative.shape
    num_entities, dim = entity.shape
    num_relations = relation.shape[0]

    # Stack all four tables (all share D) and use additive row offsets.
    table = jnp.concatenate(
        [origin_entity, entity, origin_relation, relation], axis=0)
    off_oe = 0
    off_e = num_entities
    off_or = 2 * num_entities
    off_r = 2 * num_entities + num_relations

    pos_h = positive[:, 0]
    pos_r = positive[:, 1]
    pos_t = positive[:, 2]

    if mode == "head-batch":
        # head = cat(pos_head, neg_head) along dim 1;  tail = pos_tail
        ent_main = jnp.concatenate([pos_h[:, None], negative], axis=1)  # (B,1+NEG)
        ent_side = pos_t                                                # (B,)
    elif mode == "tail-batch":
        ent_main = jnp.concatenate([pos_t[:, None], negative], axis=1)
        ent_side = pos_h
    else:
        raise ValueError(f"unknown mode {mode}")

    # Pack every needed row index (origin + student entity tables, origin +
    # student relation tables) into ONE index vector.  The interleaved
    # ent_main layout means a simple reshape yields cat(pos, neg) directly.
    idx = jnp.concatenate([
        ent_main.reshape(-1) + off_oe,   # origin entity: main (B*(1+NEG))
        ent_side + off_oe,               # origin entity: side (B)
        ent_main.reshape(-1) + off_e,    # student entity: main
        ent_side + off_e,                # student entity: side
        pos_r + off_or,                  # origin relation (B)
        pos_r + off_r,                   # student relation (B)
    ]).astype(jnp.int32)

    gathered = fused_gather(table, idx)  # (N_total, D)

    n_main = batch * (1 + neg_size)
    o = 0
    o_main = gathered[o:o + n_main].reshape(batch, 1 + neg_size, dim); o += n_main
    o_side = gathered[o:o + batch].reshape(batch, 1, dim);             o += batch
    s_main = gathered[o:o + n_main].reshape(batch, 1 + neg_size, dim); o += n_main
    s_side = gathered[o:o + batch].reshape(batch, 1, dim);             o += batch
    o_rel = gathered[o:o + batch].reshape(batch, 1, dim);              o += batch
    s_rel = gathered[o:o + batch].reshape(batch, 1, dim);              o += batch

    if mode == "head-batch":
        origin_head, origin_tail = o_main, o_side
        head, tail = s_main, s_side
    else:  # tail-batch
        origin_tail, origin_head = o_main, o_side
        tail, head = s_main, s_side

    return (origin_head, o_rel, origin_tail, head, s_rel, tail)


# ---------------------------------------------------------------------------
# DualDEManager2 (JAX version). Parameters are initialized deterministically
# in-script (the original loads a .pt checkpoint; we synthesize them instead).
# ---------------------------------------------------------------------------
def _xavier_uniform(key, shape, dtype=jnp.float32):
    fan_out, fan_in = shape
    bound = (6.0 / (fan_in + fan_out)) ** 0.5
    return jax.random.uniform(key, shape, dtype, minval=-bound, maxval=bound)


class DualDEManager2:
    def __init__(self, key, num_entities, num_relations, dim):
        k0, k1, k2, k3 = jax.random.split(key, 4)
        # "pretrained" origin embeddings -> deterministic synthetic values
        self.origin_entity_embedding = (
            jax.random.normal(k0, (num_entities, dim), jnp.float32) * 0.1)
        self.origin_relation_embedding = (
            jax.random.normal(k1, (num_relations, dim), jnp.float32) * 0.1)
        # student embeddings re-initialized with xavier_uniform_, as in __init__
        self.entity_embedding = _xavier_uniform(k2, (num_entities, dim))
        self.relation_embedding = _xavier_uniform(k3, (num_relations, dim))

    def forward(self, sample, mode):
        positive, negative = sample
        return _forward_impl(self.origin_entity_embedding,
                             self.origin_relation_embedding,
                             self.entity_embedding,
                             self.relation_embedding,
                             positive, negative, mode)

    def get_embedding(self):
        return (self.entity_embedding, self.relation_embedding)


# ---------------------------------------------------------------------------
if __name__ == "__main__":
    key = jax.random.PRNGKey(0)
    k_model, k_pos_h, k_pos_r, k_pos_t, k_neg = jax.random.split(key, 5)

    NUM_ENTITIES = 64
    NUM_RELATIONS = 16
    DIM = 128          # lane-aligned embedding dim
    BATCH = 2
    NEG = 8

    manager = DualDEManager2(k_model, NUM_ENTITIES, NUM_RELATIONS, DIM)

    # positive triples (h, r, t) and negative entity samples, as in KGE training
    pos_h = jax.random.randint(k_pos_h, (BATCH, 1), 0, NUM_ENTITIES)
    pos_r = jax.random.randint(k_pos_r, (BATCH, 1), 0, NUM_RELATIONS)
    pos_t = jax.random.randint(k_pos_t, (BATCH, 1), 0, NUM_ENTITIES)
    positive = jnp.concatenate([pos_h, pos_r, pos_t], axis=1).astype(jnp.int32)
    negative = jax.random.randint(k_neg, (BATCH, NEG), 0,
                                  NUM_ENTITIES).astype(jnp.int32)
    sample = (positive, negative)

    for mode in ("head-batch", "tail-batch"):
        outs = manager.forward(sample, mode)
        outs = jax.block_until_ready(outs)
        o_head, o_rel, o_tail, head, rel, tail = outs

        # correctness check vs plain-JAX reference gathers
        def ref_extract(tbl):
            neg_rows = tbl[negative.reshape(-1)].reshape(BATCH, NEG, DIM)
            if mode == "head-batch":
                h = jnp.concatenate([tbl[positive[:, 0]][:, None, :], neg_rows],
                                    axis=1)
                t = tbl[positive[:, 2]][:, None, :]
            else:
                t = jnp.concatenate([tbl[positive[:, 2]][:, None, :], neg_rows],
                                    axis=1)
                h = tbl[positive[:, 0]][:, None, :]
            return h, t

        ref_o_head, ref_o_tail = ref_extract(manager.origin_entity_embedding)
        ref_head, ref_tail = ref_extract(manager.entity_embedding)
        ref_o_rel = manager.origin_relation_embedding[positive[:, 1]][:, None, :]
        ref_rel = manager.relation_embedding[positive[:, 1]][:, None, :]

        assert jnp.allclose(o_head, ref_o_head)
        assert jnp.allclose(o_tail, ref_o_tail)
        assert jnp.allclose(o_rel, ref_o_rel)
        assert jnp.allclose(head, ref_head)
        assert jnp.allclose(tail, ref_tail)
        assert jnp.allclose(rel, ref_rel)
        assert o_rel.shape == (BATCH, 1, DIM)
        assert head.shape[0] == BATCH and tail.shape[0] == BATCH

    print("KERNEL_OK")
</pallas_src>

<mosaic_0001>
module attributes {stable_mosaic.version = 11 : i64} {
  func.func @_fused_gather_kernel(%arg0: i32, %arg1: memref<48xi32, #tpu.memory_space<smem>>, %arg2: memref<160x128xf32, #tpu.memory_space<vmem>>, %arg3: memref<16x128xf32, #tpu.memory_space<vmem>>) attributes {dimension_semantics = [#tpu.dimension_semantics<parallel>], iteration_bounds = array<i64: 3>, scalar_prefetch = 1 : i64, scratch_operands = 0 : i64, tpu.core_type = #tpu.core_type<tc>, window_params = [{pipeline_mode = #tpu.pipeline_mode<synchronous>, transform_indices = @transform_0, window_bounds = array<i64: 160, 128>}, {transform_indices = @transform_1, window_bounds = array<i64: 16, 128>}]} {
    %c16_i32 = arith.constant 16 : i32
    %0 = arith.muli %arg0, %c16_i32 : i32
    %c0_i32 = arith.constant 0 : i32
    %1 = arith.addi %0, %c0_i32 : i32
    %2 = arith.index_cast %1 : i32 to index
    %3 = memref.load %arg1[%2] : memref<48xi32, #tpu.memory_space<smem>>
    %4 = arith.index_cast %3 : i32 to index
    %c0 = arith.constant 0 : index
    %5 = vector.load %arg2[%4, %c0] : memref<160x128xf32, #tpu.memory_space<vmem>>, vector<1x128xf32>
    %c1_i32 = arith.constant 1 : i32
    %6 = arith.addi %0, %c1_i32 : i32
    %7 = arith.index_cast %6 : i32 to index
    %8 = memref.load %arg1[%7] : memref<48xi32, #tpu.memory_space<smem>>
    %9 = arith.index_cast %8 : i32 to index
    %c0_0 = arith.constant 0 : index
    %10 = vector.load %arg2[%9, %c0_0] : memref<160x128xf32, #tpu.memory_space<vmem>>, vector<1x128xf32>
    %c2_i32 = arith.constant 2 : i32
    %11 = arith.addi %0, %c2_i32 : i32
    %12 = arith.index_cast %11 : i32 to index
    %13 = memref.load %arg1[%12] : memref<48xi32, #tpu.memory_space<smem>>
    %14 = arith.index_cast %13 : i32 to index
    %c0_1 = arith.constant 0 : index
    %15 = vector.load %arg2[%14, %c0_1] : memref<160x128xf32, #tpu.memory_space<vmem>>, vector<1x128xf32>
    %c3_i32 = arith.constant 3 : i32
    %16 = arith.addi %0, %c3_i32 : i32
    %17 = arith.index_cast %16 : i32 to index
    %18 = memref.load %arg1[%17] : memref<48xi32, #tpu.memory_space<smem>>
    %19 = arith.index_cast %18 : i32 to index
    %c0_2 = arith.constant 0 : index
    %20 = vector.load %arg2[%19, %c0_2] : memref<160x128xf32, #tpu.memory_space<vmem>>, vector<1x128xf32>
    %c4_i32 = arith.constant 4 : i32
    %21 = arith.addi %0, %c4_i32 : i32
    %22 = arith.index_cast %21 : i32 to index
    %23 = memref.load %arg1[%22] : memref<48xi32, #tpu.memory_space<smem>>
    %24 = arith.index_cast %23 : i32 to index
    %c0_3 = arith.constant 0 : index
    %25 = vector.load %arg2[%24, %c0_3] : memref<160x128xf32, #tpu.memory_space<vmem>>, vector<1x128xf32>
    %c5_i32 = arith.constant 5 : i32
    %26 = arith.addi %0, %c5_i32 : i32
    %27 = arith.index_cast %26 : i32 to index
    %28 = memref.load %arg1[%27] : memref<48xi32, #tpu.memory_space<smem>>
    %29 = arith.index_cast %28 : i32 to index
    %c0_4 = arith.constant 0 : index
    %30 = vector.load %arg2[%29, %c0_4] : memref<160x128xf32, #tpu.memory_space<vmem>>, vector<1x128xf32>
    %c6_i32 = arith.constant 6 : i32
    %31 = arith.addi %0, %c6_i32 : i32
    %32 = arith.index_cast %31 : i32 to index
    %33 = memref.load %arg1[%32] : memref<48xi32, #tpu.memory_space<smem>>
    %34 = arith.index_cast %33 : i32 to index
    %c0_5 = arith.constant 0 : index
    %35 = vector.load %arg2[%34, %c0_5] : memref<160x128xf32, #tpu.memory_space<vmem>>, vector<1x128xf32>
    %c7_i32 = arith.constant 7 : i32
    %36 = arith.addi %0, %c7_i32 : i32
    %37 = arith.index_cast %36 : i32 to index
    %38 = memref.load %arg1[%37] : memref<48xi32, #tpu.memory_space<smem>>
    %39 = arith.index_cast %38 : i32 to index
    %c0_6 = arith.constant 0 : index
    %40 = vector.load %arg2[%39, %c0_6] : memref<160x128xf32, #tpu.memory_space<vmem>>, vector<1x128xf32>
    %c8_i32 = arith.constant 8 : i32
    %41 = arith.addi %0, %c8_i32 : i32
    %42 = arith.index_cast %41 : i32 to index
    %43 = memref.load %arg1[%42] : memref<48xi32, #tpu.memory_space<smem>>
    %44 = arith.index_cast %43 : i32 to index
    %c0_7 = arith.constant 0 : index
    %45 = vector.load %arg2[%44, %c0_7] : memref<160x128xf32, #tpu.memory_space<vmem>>, vector<1x128xf32>
    %c9_i32 = arith.constant 9 : i32
    %46 = arith.addi %0, %c9_i32 : i32
    %47 = arith.index_cast %46 : i32 to index
    %48 = memref.load %arg1[%47] : memref<48xi32, #tpu.memory_space<smem>>
    %49 = arith.index_cast %48 : i32 to index
    %c0_8 = arith.constant 0 : index
    %50 = vector.load %arg2[%49, %c0_8] : memref<160x128xf32, #tpu.memory_space<vmem>>, vector<1x128xf32>
    %c10_i32 = arith.constant 10 : i32
    %51 = arith.addi %0, %c10_i32 : i32
    %52 = arith.index_cast %51 : i32 to index
    %53 = memref.load %arg1[%52] : memref<48xi32, #tpu.memory_space<smem>>
    %54 = arith.index_cast %53 : i32 to index
    %c0_9 = arith.constant 0 : index
    %55 = vector.load %arg2[%54, %c0_9] : memref<160x128xf32, #tpu.memory_space<vmem>>, vector<1x128xf32>
    %c11_i32 = arith.constant 11 : i32
    %56 = arith.addi %0, %c11_i32 : i32
    %57 = arith.index_cast %56 : i32 to index
    %58 = memref.load %arg1[%57] : memref<48xi32, #tpu.memory_space<smem>>
    %59 = arith.index_cast %58 : i32 to index
    %c0_10 = arith.constant 0 : index
    %60 = vector.load %arg2[%59, %c0_10] : memref<160x128xf32, #tpu.memory_space<vmem>>, vector<1x128xf32>
    %c12_i32 = arith.constant 12 : i32
    %61 = arith.addi %0, %c12_i32 : i32
    %62 = arith.index_cast %61 : i32 to index
    %63 = memref.load %arg1[%62] : memref<48xi32, #tpu.memory_space<smem>>
    %64 = arith.index_cast %63 : i32 to index
    %c0_11 = arith.constant 0 : index
    %65 = vector.load %arg2[%64, %c0_11] : memref<160x128xf32, #tpu.memory_space<vmem>>, vector<1x128xf32>
    %c13_i32 = arith.constant 13 : i32
    %66 = arith.addi %0, %c13_i32 : i32
    %67 = arith.index_cast %66 : i32 to index
    %68 = memref.load %arg1[%67] : memref<48xi32, #tpu.memory_space<smem>>
    %69 = arith.index_cast %68 : i32 to index
    %c0_12 = arith.constant 0 : index
    %70 = vector.load %arg2[%69, %c0_12] : memref<160x128xf32, #tpu.memory_space<vmem>>, vector<1x128xf32>
    %c14_i32 = arith.constant 14 : i32
    %71 = arith.addi %0, %c14_i32 : i32
    %72 = arith.index_cast %71 : i32 to index
    %73 = memref.load %arg1[%72] : memref<48xi32, #tpu.memory_space<smem>>
    %74 = arith.index_cast %73 : i32 to index
    %c0_13 = arith.constant 0 : index
    %75 = vector.load %arg2[%74, %c0_13] : memref<160x128xf32, #tpu.memory_space<vmem>>, vector<1x128xf32>
    %c15_i32 = arith.constant 15 : i32
    %76 = arith.addi %0, %c15_i32 : i32
    %77 = arith.index_cast %76 : i32 to index
    %78 = memref.load %arg1[%77] : memref<48xi32, #tpu.memory_space<smem>>
    %79 = arith.index_cast %78 : i32 to index
    %c0_14 = arith.constant 0 : index
    %80 = vector.load %arg2[%79, %c0_14] : memref<160x128xf32, #tpu.memory_space<vmem>>, vector<1x128xf32>
    %81 = tpu.concatenate %5, %10, %15, %20, %25, %30, %35, %40, %45, %50, %55, %60, %65, %70, %75, %80 in 0 : vector<1x128xf32>, vector<1x128xf32>, vector<1x128xf32>, vector<1x128xf32>, vector<1x128xf32>, vector<1x128xf32>, vector<1x128xf32>, vector<1x128xf32>, vector<1x128xf32>, vector<1x128xf32>, vector<1x128xf32>, vector<1x128xf32>, vector<1x128xf32>, vector<1x128xf32>, vector<1x128xf32>, vector<1x128xf32> -> vector<16x128xf32>
    %c0_15 = arith.constant 0 : index
    %c0_16 = arith.constant 0 : index
    %82 = vector.load %arg3[%c0_15, %c0_16] : memref<16x128xf32, #tpu.memory_space<vmem>>, vector<16x128xf32>
    tpu.vector_store %arg3[%c0_15, %c0_16], %81 {strides = array<i32>} : memref<16x128xf32, #tpu.memory_space<vmem>>, vector<16x128xf32>,
    return
  }
  func.func @transform_0(%arg0: i32, %arg1: memref<48xi32, #tpu.memory_space<smem>>) -> (i32, i32) {
    %c0_i32 = arith.constant 0 : i32
    %c0_i32_0 = arith.constant 0 : i32
    %c0_i32_1 = arith.constant 0 : i32
    return %c0_i32, %c0_i32_0 : i32, i32
  }
  func.func @transform_1(%arg0: i32, %arg1: memref<48xi32, #tpu.memory_space<smem>>) -> (i32, i32) {
    %c0_i32 = arith.constant 0 : i32
    %c0_i32_0 = arith.constant 0 : i32
    return %arg0, %c0_i32 : i32, i32
  }
}

</mosaic_0001>

<bundles_post_ra>
// kernel: _forward_impl.1
= control target key start
LH: loop header
LB: loop body
LE: loop exit
PB: predicated region body
PF: predicated region fallthrough
CT: control target
= control target key end

     0   :  { %s463_s0 = inlined_call_operand.vmem [shape: s32[48], index: 0, kind: input, shape index: {}]   ;;  %s464_s1 = inlined_call_operand.vmem [shape: f32[160,128], index: 1, kind: input, shape index: {}]   ;;  %s465_s2 = inlined_call_operand.vmem [shape: f32[48,128], index: 2, kind: output, shape index: {}]  }
   0x1   :  { %s7_s11 = sshll.u32 %s463_s0, 4  ;;  %s8_s11 = int_to_ptr.vmem [resolvable:$true] %s7_s11 }
   0x2   :  { %s312_s12 = scalar_lea.vmem %s8_s11, 16  ;;  %p317_p1 = scmp.lt.s32.totalorder %s8_s11, %s8_s11 }
   0x3   :  { %p313_p0 = scmp.ne.s32.totalorder %s8_s11, %s312_s12  ;;  %p318_p2 = scmp.lt.s32.totalorder %s312_s12, %s312_s12 }
   0x5   :  { %p319_p3 = por %p318_p2, %p317_p1 }
   0x7   :  { %p320_p4 = pnand %p319_p3, %p313_p0 }
   0x9   :  { %323 = shalt.err (!%p320_p4)  }
   0xa   :  { %s334_s13 = smov [#allocation3]  }
   0xb   :  { %10 = dma.vmem_to_smem %s8_s11, 16, %s334_s13, [#allocation2] }
   0xc   :  { %328 = dma.done.wait [#allocation2], 16 }
   0xd   :  { %329 = vsyncadd [#allocation2], 4294967280 }
   0xe   :  { %12 = sfence }
   0xf   :  { %s353_s14 = smov 0  }
  0x10 LB: > { %s294_s0 = sadd.s32 4294967295, %s332_s14   ;;  %p297_p5 = scmp.ge.s32.totalorder %s332_s14, 1  ;;  %s332_s14 = sphi %s353_s14, %s18_s14  }
  0x11   : > { %p84_p6 = scmp.lt.s32.totalorder %s332_s14, 4 }
  0x13   : > { %p85_p7 = pnand %p297_p5, %p84_p6 }
  0x14   : > { %s298_s15 = sshll.u32 (!%p85_p7), %s294_s0, 1  ;;  %s361_s16 = sshll.u32 (!%p85_p7), %s294_s0, 4  ;;  %vm211_vm0 = vcmask (!%p85_p7), 1040384   ;;  %vm213_vm1 = vcmask (!%p85_p7), 1041408   ;;  %vm215_vm2 = vcmask (!%p85_p7), 1042432   ;;  %vm217_vm3 = vcmask (!%p85_p7), 1043456  }
  0x15   : > { %88 = sbr.rel (%p85_p7) target bundleno = 56 (0x38), region = 24  ;;  %p100_p8 = scmp.lt.s32.totalorder (!%p85_p7), %s298_s15, 5  ;;  %vm219_vm4 = vcmask (!%p85_p7), 1044480   ;;  %vm221_vm5 = vcmask (!%p85_p7), 1045504   ;;  %vm223_vm6 = vcmask (!%p85_p7), 1046528  }
  0x16   : > { %s106_s17 = sld [smem:[#allocation3 + %s361_s16]] (!%p85_p7)  ;;  %s109_s18 = sadd.s32 (!%p85_p7), 1, %s361_s16 }
  0x17   : > { %s113_s19 = sadd.s32 (!%p85_p7), 2, %s361_s16  ;;  %s110_s20 = sld [smem:[#allocation3 + %s109_s18]] (!%p85_p7) }
  0x18   : > { %s114_s21 = sld [smem:[#allocation3 + %s113_s19]] (!%p85_p7)  ;;  %s117_s23 = sadd.s32 (!%p85_p7), 3, %s361_s16 }
  0x19   : > { %s118_s27 = sld [smem:[#allocation3 + %s117_s23]] (!%p85_p7)  ;;  %s121_s3 = sadd.s32 (!%p85_p7), 4, %s361_s16 }
  0x1a   : > { %s122_s4 = sld [smem:[#allocation3 + %s121_s3]] (!%p85_p7)  ;;  %s125_s5 = sadd.s32 (!%p85_p7), 5, %s361_s16 }
  0x1b   : > { %s126_s6 = sld [smem:[#allocation3 + %s125_s5]] (!%p85_p7)  ;;  %s129_s7 = sadd.s32 (!%p85_p7), 6, %s361_s16 }
  0x1c   : > { %s467_s15 = smov (!%p100_p8, %s298_s15), 5  ;;  %s107_s30 = scalar_lea.vmem %s464_s1, %s106_s17 }
  0x1d   : > { %s299_s22 = sshll.u32 %s467_s15, 3  ;;  %v108_v0 = vld [vmem:[%s107_s30] sm:$0x1]  ;;  %s111_s10 = scalar_lea.vmem %s464_s1, %s110_s20 }
  0x1e   : > { %s370_s26 = scalar_lea.vmem %s465_s2, %s299_s22  ;;  %s115_s13 = scalar_lea.vmem %s464_s1, %s114_s21  ;;  %v112_v1 = vld [vmem:[%s111_s10] sm:$0x1] }
  0x1f   : > { %v116_v2 = vld [vmem:[%s115_s13] sm:$0x1]  ;;  %s384_s0 = sld [smem:[#allocation3 + %s129_s7]]  ;;  %s133_s15 = sadd.s32 7, %s361_s16  ;;  %v170_v3 = vrot.slane %v112_v1, 7 }
  0x20   : > { %s119_s19 = scalar_lea.vmem %s464_s1, %s118_s27  ;;  %s390_s22 = sld [smem:[#allocation3 + %s133_s15]]  ;;  %v173_v4 = vrot.slane %v116_v2, 6 }
  0x21   : > { %v120_v5 = vld [vmem:[%s119_s19] sm:$0x1]  ;;  %s137_s20 = sadd.s32 8, %s361_s16  ;;  %s141_s21 = sadd.s32 9, %s361_s16  ;;  %v212_v7 = vsel %vm211_vm0, %v108_v0, %v170_v3 }
  0x22   : > { %s123_s25 = scalar_lea.vmem %s464_s1, %s122_s4  ;;  %v176_v6 = vrot.slane %v120_v5, 5  ;;  %s398_s27 = sld [smem:[#allocation3 + %s137_s20]]  ;;  %v214_v9 = vsel %vm213_vm1, %v212_v7, %v173_v4 }
  0x23   : > { %v124_v8 = vld [vmem:[%s123_s25] sm:$0x1]  ;;  %s127_s30 = scalar_lea.vmem %s464_s1, %s126_s6  ;;  %s404_s3 = sld [smem:[#allocation3 + %s141_s21]] }
  0x24   : > { %v128_v10 = vld [vmem:[%s127_s30] sm:$0x1]  ;;  %v179_v11 = vrot.slane %v124_v8, 4  ;;  %v216_v12 = vsel %vm215_vm2, %v214_v9, %v176_v6  ;;  %s145_s4 = sadd.s32 10, %s361_s16  ;;  %s149_s5 = sadd.s32 11, %s361_s16 }
  0x25   : > { %s131_s9 = scalar_lea.vmem %s464_s1, %s384_s0  ;;  %v182_v13 = vrot.slane %v128_v10, 3  ;;  %s146_s6 = sld [smem:[#allocation3 + %s145_s4]] }
  0x26   : > { %v132_v14 = vld [vmem:[%s131_s9] sm:$0x1]  ;;  %s135_s12 = scalar_lea.vmem %s464_s1, %s390_s22  ;;  %v218_v15 = vsel %vm217_vm3, %v216_v12, %v179_v11  ;;  %s150_s13 = sld [smem:[#allocation3 + %s149_s5]] }
  0x27   : > { %v136_v16 = vld [vmem:[%s135_s12] sm:$0x1]  ;;  %v185_v17 = vrot.slane %v132_v14, 2  ;;  %v220_v18 = vsel %vm219_vm4, %v218_v15, %v182_v13  ;;  %s153_s0 = sadd.s32 12, %s361_s16  ;;  %s157_s15 = sadd.s32 13, %s361_s16 }
  0x28   : > { %v188_v19 = vrot.slane %v136_v16, 1  ;;  %s139_s19 = scalar_lea.vmem %s464_s1, %s398_s27  ;;  %s154_s22 = sld [smem:[#allocation3 + %s153_s0]] }
  0x29   : > { %v222_v20 = vsel %vm221_vm5, %v220_v18, %v185_v17  ;;  %s143_s23 = scalar_lea.vmem %s464_s1, %s404_s3  ;;  %s158_s24 = sld [smem:[#allocation3 + %s157_s15]]  ;;  %v140_v22 = vld [vmem:[%s139_s19] sm:$0x1] }
  0x2a   : > { %v224_v21 = vsel %vm223_vm6, %v222_v20, %v188_v19  ;;  %v144_v23 = vld [vmem:[%s143_s23] sm:$0x1]  ;;  %s161_s25 = sadd.s32 14, %s361_s16  ;;  %s165_s28 = sadd.s32 15, %s361_s16 }
  0x2b   : > { %232 = vst [vmem:[%s370_s26] sm:$0xff] %v224_v21  ;;  %s147_s4 = scalar_lea.vmem %s464_s1, %s146_s6  ;;  %s162_s27 = sld [smem:[#allocation3 + %s161_s25]]  ;;  %v191_v24 = vrot.slane %v144_v23, 7 }
  0x2c   : > { %v148_v25 = vld [vmem:[%s147_s4] sm:$0x1]  ;;  %s151_s8 = scalar_lea.vmem %s464_s1, %s150_s13  ;;  %s166_s3 = sld [smem:[#allocation3 + %s165_s28]] }
  0x2d   : > { %v152_v26 = vld [vmem:[%s151_s8] sm:$0x1]  ;;  %v194_v27 = vrot.slane %v148_v25, 6  ;;  %v225_v28 = vsel %vm211_vm0, %v140_v22, %v191_v24 }
  0x2e   : > { %s155_s16 = scalar_lea.vmem %s464_s1, %s154_s22  ;;  %v197_v29 = vrot.slane %v152_v26, 5 }
  0x2f   : > { %v156_v30 = vld [vmem:[%s155_s16] sm:$0x1]  ;;  %s159_s12 = scalar_lea.vmem %s464_s1, %s158_s24  ;;  %v226_v31 = vsel %vm213_vm1, %v225_v28, %v194_v27 }
  0x30   : > { %v160_v32 = vld [vmem:[%s159_s12] sm:$0x1]  ;;  %v200_v33 = vrot.slane %v156_v30, 4  ;;  %v227_v34 = vsel %vm215_vm2, %v226_v31, %v197_v29 }
  0x31   : > { %s163_s15 = scalar_lea.vmem %s464_s1, %s162_s27  ;;  %v203_v35 = vrot.slane %v160_v32, 3 }
  0x32   : > { %v164_v36 = vld [vmem:[%s163_s15] sm:$0x1]  ;;  %s167_s19 = scalar_lea.vmem %s464_s1, %s166_s3  ;;  %v228_v37 = vsel %vm217_vm3, %v227_v34, %v200_v33 }
  0x33   : > { %v168_v38 = vld [vmem:[%s167_s19] sm:$0x1]  ;;  %v206_v39 = vrot.slane %v164_v36, 2  ;;  %v229_v40 = vsel %vm219_vm4, %v228_v37, %v203_v35 }
  0x34   : > { %v209_v41 = vrot.slane %v168_v38, 1 }
  0x35   : > { %v230_v42 = vsel %vm221_vm5, %v229_v40, %v206_v39 }
  0x36   : > { %v231_v43 = vsel %vm223_vm6, %v230_v42, %v209_v41 }
  0x37   : > { %233 = vst [vmem:[%s370_s26 + $0x8] sm:$0xff] %v231_v43 }
  0x38 PF: > { %s18_s14 = sadd.s32 1, %s332_s14  }
  0x39   : > { %p15_p9 = scmp.ge.s32.totalorder %s18_s14, 5  }
  0x3b   :  { %17 = sbr.rel (!%p15_p9) target bundleno = 16 (0x10), region = 67 }

</bundles_post_ra>
